<compile_context>
chip_gen: v6e
topology: v6e:2x2x1
jax: 0.10.0
libtpu: 0.0.40
codegen_flags: <defaults>
</compile_context>

<pallas_src>
import functools

import jax
import jax.numpy as jnp
import numpy as np
from jax import lax
from jax.experimental import pallas as pl
from jax.experimental.pallas import tpu as pltpu


# --------------------------------------------------------------------------- #
# pltpu.roll rotation-convention probe (run once, outside jit)
# --------------------------------------------------------------------------- #
def _probe_roll_is_jnp():
    """True iff pltpu.roll(x, s, axis)[..., i] == x[..., (i - s) % n] (jnp.roll)."""
    def kern(x_ref, o_ref):
        o_ref[...] = pltpu.roll(x_ref[...], shift=1, axis=1)

    x = jnp.arange(8 * 128, dtype=jnp.float32).reshape(8, 128)
    y = pl.pallas_call(
        kern,
        out_shape=jax.ShapeDtypeStruct((8, 128), jnp.float32),
        grid=(1,),
        in_specs=[pl.BlockSpec((8, 128), lambda i: (0, 0))],
        out_specs=pl.BlockSpec((8, 128), lambda i: (0, 0)),
    )(x)
    return bool(np.asarray(jax.block_until_ready(y))[0, 1] == 0.0)


def _shift_amount(d, m, roll_is_jnp):
    """Roll amount so that rolled[..., i] == x[..., (i + d) % m]."""
    return (-d) % m if roll_is_jnp else d % m


# --------------------------------------------------------------------------- #
# Conv2Plus1D on the "lanes" layout (trunk: initial conv, ResidualBlocks 1-2)
#   activations: (C, M) with M = B*T*H*W folded onto the lane axis
# --------------------------------------------------------------------------- #
def _conv2plus1d_lanes(x, ws_ref, bs_ref, wt_ref, bt_ref, T, H, W,
                       roll_is_jnp, relu):
    """x: (C, M) f32 -> (F, M) f32.   ws_ref: (9, F, C) bf16, wt_ref: (3, F, F) bf16."""
    _, m = x.shape
    hw = H * W

    pos = lax.broadcasted_iota(jnp.int32, (1, m), 1)
    ww = pos % W
    hh = (pos // W) % H
    tt = (pos // hw) % T

    def shifted(src, d):
        if d == 0:
            return src
        return pltpu.roll(src, shift=_shift_amount(d, m, roll_is_jnp), axis=1)

    # ---- spatial (1,3,3) conv: 9 masked lane-shifted taps -> 9 MXU dots ----
    acc = None
    for kh in range(3):
        for kw in range(3):
            dh, dw = kh - 1, kw - 1
            valid = ((ww + dw >= 0) & (ww + dw < W) &
                     (hh + dh >= 0) & (hh + dh < H))
            tap = jnp.where(valid, shifted(x, dh * W + dw), 0.0)
            part = jnp.dot(ws_ref[kh * 3 + kw], tap.astype(jnp.bfloat16),
                           preferred_element_type=jnp.float32)
            acc = part if acc is None else acc + part
    y = acc + bs_ref[...]                                    # (F, M) f32

    # ---- temporal (3,1,1) conv: whole-frame lane shifts of VMEM-resident y ----
    out = jnp.dot(wt_ref[1], y.astype(jnp.bfloat16),
                  preferred_element_type=jnp.float32)
    for kt in (0, 2):
        dt = kt - 1
        valid = (tt + dt >= 0) & (tt + dt < T)
        tap = jnp.where(valid, shifted(y, dt * hw), 0.0)
        out = out + jnp.dot(wt_ref[kt], tap.astype(jnp.bfloat16),
                            preferred_element_type=jnp.float32)
    out = out + bt_ref[...]
    return jnp.maximum(out, 0.0) if relu else out


def _initial_kernel(dims, roll_is_jnp, x_ref, ws_ref, bs_ref, wt_ref, bt_ref,
                    o_ref):
    """initial_conv (Conv2Plus1D) + ReLU fused in one kernel."""
    T, H, W = dims
    x = x_ref[...].astype(jnp.float32)
    z = _conv2plus1d_lanes(x, ws_ref, bs_ref, wt_ref, bt_ref, T, H, W,
                           roll_is_jnp, relu=True)
    o_ref[...] = z.astype(o_ref.dtype)


def _resblock_kernel(dims, roll_is_jnp, x_ref,
                     ws1_ref, bs1_ref, wt1_ref, bt1_ref,
                     ws2_ref, bs2_ref, wt2_ref, bt2_ref, wd_ref, o_ref):
    """ResidualBlock: conv1 + ReLU + conv2 + (1x1x1 downsample) residual add.

    The conv1 output never leaves VMEM (no HBM round trip, no re-im2col).
    No ReLU after the residual add (matches the PyTorch module).
    """
    T, H, W = dims
    x = x_ref[...].astype(jnp.float32)
    y = _conv2plus1d_lanes(x, ws1_ref, bs1_ref, wt1_ref, bt1_ref, T, H, W,
                           roll_is_jnp, relu=True)
    z = _conv2plus1d_lanes(y, ws2_ref, bs2_ref, wt2_ref, bt2_ref, T, H, W,
                           roll_is_jnp, relu=False)
    res = jnp.dot(wd_ref[...], x_ref[...], preferred_element_type=jnp.float32)
    o_ref[...] = (z + res).astype(o_ref.dtype)


# --------------------------------------------------------------------------- #
# Fused tail kernel: ResidualBlock3 + MaxPool3d + ResidualBlock4 + head.
# Transposed (positions, channels) layout -> F=64/128 is lane-dense; taps and
# pooling are gathered with tiny 0/1 selection matrices applied on the MXU.
# --------------------------------------------------------------------------- #
def _tap_select(m, T, H, W, dt, dh, dw):
    """(m, m) 0/1 matrix S with (S @ x)[p] = x[p + dt*H*W + dh*W + dw] ('same' pad)."""
    hw = H * W
    pp = lax.broadcasted_iota(jnp.int32, (m, m), 0)
    ii = lax.broadcasted_iota(jnp.int32, (m, m), 1)
    w = pp % W
    h = (pp // W) % H
    t = (pp // hw) % T
    valid = ((w + dw >= 0) & (w + dw < W) & (h + dh >= 0) & (h + dh < H) &
             (t + dt >= 0) & (t + dt < T))
    sel = valid & (ii == pp + (dt * hw + dh * W + dw))
    return sel.astype(jnp.float32)


def _pool_select(m_out, m_in, T, H, W, dt, dh, dw):
    """(m_out, m_in) gather matrix for one corner of a 2x2x2 max pool."""
    Tp, Hp, Wp = T // 2, H // 2, W // 2
    pp = lax.broadcasted_iota(jnp.int32, (m_out, m_in), 0)
    ii = lax.broadcasted_iota(jnp.int32, (m_out, m_in), 1)
    b = pp // (Tp * Hp * Wp)
    t = (pp // (Hp * Wp)) % Tp
    h = (pp // Wp) % Hp
    w = pp % Wp
    src = ((b * T + 2 * t + dt) * H + 2 * h + dh) * W + 2 * w + dw
    return (ii == src).astype(jnp.float32)


def _conv2plus1d_rows(x, wsT_ref, bsT_ref, wtT_ref, btT_ref, T, H, W, relu):
    """Conv2Plus1D on an (M, C) block.  wsT_ref: (9, C, F), wtT_ref: (3, F, F) (transposed)."""
    m = x.shape[0]
    acc = None
    for kh in range(3):
        for kw in range(3):
            tap = jnp.dot(_tap_select(m, T, H, W, 0, kh - 1, kw - 1), x,
                          preferred_element_type=jnp.float32)
            part = jnp.dot(tap, wsT_ref[kh * 3 + kw],
                           preferred_element_type=jnp.float32)
            acc = part if acc is None else acc + part
    y = acc + bsT_ref[...]                                   # (M, F)
    out = jnp.dot(y, wtT_ref[1], preferred_element_type=jnp.float32)
    for kt in (0, 2):
        tap = jnp.dot(_tap_select(m, T, H, W, kt - 1, 0, 0), y,
                      preferred_element_type=jnp.float32)
        out = out + jnp.dot(tap, wtT_ref[kt], preferred_element_type=jnp.float32)
    out = out + btT_ref[...]
    return jnp.maximum(out, 0.0) if relu else out


def _tail_kernel(dims3, batch, x_ref,
                 a_ws1, a_bs1, a_wt1, a_bt1, a_ws2, a_bs2, a_wt2, a_bt2, a_wd,
                 b_ws1, b_bs1, b_wt1, b_bt1, b_ws2, b_bs2, b_wt2, b_bt2, b_wd,
                 w1_ref, b1_ref, w2_ref, b2_ref, o_ref):
    T3, H3, W3 = dims3
    T4, H4, W4 = T3 // 2, H3 // 2, W3 // 2
    m3 = x_ref.shape[0]
    m4 = batch * T4 * H4 * W4

    x = x_ref[...]                                           # (m3, C3) f32

    # ResidualBlock 3
    y = _conv2plus1d_rows(x, a_ws1, a_bs1, a_wt1, a_bt1, T3, H3, W3, relu=True)
    z = _conv2plus1d_rows(y, a_ws2, a_bs2, a_wt2, a_bt2, T3, H3, W3, relu=False)
    z = z + jnp.dot(x, a_wd[...], preferred_element_type=jnp.float32)

    # MaxPool3d(2): 8 MXU row-gathers + elementwise max
    pooled = None
    for dt in range(2):
        for dh in range(2):
            for dw in range(2):
                g = _pool_select(m4, m3, T3, H3, W3, dt, dh, dw)
                v = jnp.dot(g, z, preferred_element_type=jnp.float32)
                pooled = v if pooled is None else jnp.maximum(pooled, v)

    # ResidualBlock 4
    y4 = _conv2plus1d_rows(pooled, b_ws1, b_bs1, b_wt1, b_bt1, T4, H4, W4,
                           relu=True)
    z4 = _conv2plus1d_rows(y4, b_ws2, b_bs2, b_wt2, b_bt2, T4, H4, W4,
                           relu=False)
    z4 = z4 + jnp.dot(pooled, b_wd[...], preferred_element_type=jnp.float32)

    # Head: AdaptiveAvgPool3d((1,1,1)) + Flatten + dense1 + ReLU + final_dense.
    # Dropout(p=0.35) is identity at inference time.
    n_per_b = T4 * H4 * W4
    bb = lax.broadcasted_iota(jnp.int32, (batch, m4), 0)
    ii = lax.broadcasted_iota(jnp.int32, (batch, m4), 1)
    avg = jnp.where(ii // n_per_b == bb, 1.0 / n_per_b, 0.0)
    feats = jnp.dot(avg, z4, preferred_element_type=jnp.float32)   # (B, 128)
    h = jnp.maximum(
        jnp.dot(feats, w1_ref[...], preferred_element_type=jnp.float32)
        + b1_ref[...], 0.0)
    o_ref[...] = (jnp.dot(h, w2_ref[...], preferred_element_type=jnp.float32)
                  + b2_ref[...]).astype(o_ref.dtype)


# --------------------------------------------------------------------------- #
# pallas_call wrappers (single grid step, whole arrays as blocks)
# --------------------------------------------------------------------------- #
def _fullspec(a):
    nd = a.ndim
    return pl.BlockSpec(tuple(a.shape), lambda i, nd=nd: (0,) * nd)


def _pallas_full(kernel_fn, args, out_shape, cost=None):
    nd_out = len(out_shape.shape)
    return pl.pallas_call(
        kernel_fn,
        out_shape=out_shape,
        grid=(1,),
        in_specs=[_fullspec(a) for a in args],
        out_specs=pl.BlockSpec(tuple(out_shape.shape), lambda i: (0,) * nd_out),
        compiler_params=pltpu.CompilerParams(
            dimension_semantics=("arbitrary",)),
        cost_estimate=cost,
    )(*args)


def _to_lanes(x):
    """(B, C, T, H, W) -> (C, B*T*H*W): channels on sublanes, positions on lanes."""
    B, C, T, H, W = x.shape
    return jnp.transpose(x, (1, 0, 2, 3, 4)).reshape(C, B * T * H * W)


def _maxpool_lanes(z, B, T, H, W):
    """MaxPool3d(kernel_size=2) on the (C, B*T*H*W) layout (trivial reshape+max in XLA)."""
    C = z.shape[0]
    z = z.reshape(C, B, T // 2, 2, H // 2, 2, W // 2, 2).max(axis=(3, 5, 7))
    return z.reshape(C, B * (T // 2) * (H // 2) * (W // 2))


def _initial_call(x_cm, p, dims, roll_is_jnp):
    bf = jnp.bfloat16
    C, M = x_cm.shape
    F = p["ws"].shape[1]
    cost = pl.CostEstimate(flops=int(2 * M * F * (9 * C + 3 * F)),
                           transcendentals=0,
                           bytes_accessed=int(2 * M * (C + F)))
    return _pallas_full(
        functools.partial(_initial_kernel, dims, roll_is_jnp),
        [x_cm, p["ws"].astype(bf), p["bs"], p["wt"].astype(bf), p["bt"]],
        jax.ShapeDtypeStruct((F, M), bf), cost)


def _resblock_call(x_cm, blk, dims, roll_is_jnp):
    bf = jnp.bfloat16
    C, M = x_cm.shape
    F = blk["conv1"]["ws"].shape[1]
    c1, c2 = blk["conv1"], blk["conv2"]
    cost = pl.CostEstimate(
        flops=int(2 * M * F * (9 * C + 3 * F + 9 * F + 3 * F + C)),
        transcendentals=0,
        bytes_accessed=int(2 * M * (C + F)))
    args = [x_cm,
            c1["ws"].astype(bf), c1["bs"], c1["wt"].astype(bf), c1["bt"],
            c2["ws"].astype(bf), c2["bs"], c2["wt"].astype(bf), c2["bt"],
            blk["down"].astype(bf)]
    return _pallas_full(
        functools.partial(_resblock_kernel, dims, roll_is_jnp),
        args, jax.ShapeDtypeStruct((F, M), bf), cost)


def _tail_call(x_mc, blk3, blk4, head, dims3, batch):
    def tconv(p):  # pre-transposed weights for the (positions, channels) layout
        return [jnp.transpose(p["ws"], (0, 2, 1)), p["bs"].reshape(1, -1),
                jnp.transpose(p["wt"], (0, 2, 1)), p["bt"].reshape(1, -1)]
    args = ([x_mc]
            + tconv(blk3["conv1"]) + tconv(blk3["conv2"]) + [blk3["down"].T]
            + tconv(blk4["conv1"]) + tconv(blk4["conv2"]) + [blk4["down"].T]
            + [head["w1"], head["b1"], head["w2"], head["b2"]])
    out_shape = jax.ShapeDtypeStruct((batch, head["w2"].shape[1]), jnp.float32)
    return _pallas_full(functools.partial(_tail_kernel, dims3, batch),
                        args, out_shape)


# --------------------------------------------------------------------------- #
# Model assembly
# --------------------------------------------------------------------------- #
def hmdb51_of_forward(x, params, *, roll_is_jnp):
    """Inference forward of HMDB51_OF_Model.  x: (B, 2, T, H, W) f32 -> (B, 12)."""
    B, _, T, H, W = x.shape
    t, h, w = T, H, W

    # initial_conv + ReLU: one fused kernel, bf16 activations at HBM boundaries
    z = _initial_call(_to_lanes(x).astype(jnp.bfloat16), params["initial"],
                      (t, h, w), roll_is_jnp)

    # ResidualBlocks 1-2 (large N): one fused kernel each; MaxPool3d(2) in XLA
    for blk in params["blocks"][:2]:
        z = _resblock_call(z, blk, (t, h, w), roll_is_jnp)
        z = _maxpool_lanes(z, B, t, h, w)
        t, h, w = t // 2, h // 2, w // 2

    # Tail: ResidualBlock3 + MaxPool3d + ResidualBlock4 + classifier head in
    # ONE kernel, lane-dense in F (N is tiny here).
    x_mc = jnp.transpose(z.astype(jnp.float32))
    return _tail_call(x_mc, params["blocks"][2], params["blocks"][3],
                      params["head"], (t, h, w), B)


# --------------------------------------------------------------------------- #
# Deterministic synthetic parameters
# --------------------------------------------------------------------------- #
def _init_conv(key, c_in, f, kt=3):
    k1, k2, k3, k4 = jax.random.split(key, 4)
    s_s = 1.0 / np.sqrt(9 * c_in)
    s_t = 1.0 / np.sqrt(kt * f)
    return {
        "ws": jax.random.normal(k1, (9, f, c_in), jnp.float32) * s_s,
        "bs": jax.random.normal(k2, (f, 1), jnp.float32) * s_s,
        "wt": jax.random.normal(k3, (kt, f, f), jnp.float32) * s_t,
        "bt": jax.random.normal(k4, (f, 1), jnp.float32) * s_t,
    }


def init_params(key):
    ks = iter(jax.random.split(key, 32))
    params = {"initial": _init_conv(next(ks), 2, 8), "blocks": []}
    c_in = 8
    for f in (16, 32, 64, 128):
        params["blocks"].append({
            "conv1": _init_conv(next(ks), c_in, f),
            "conv2": _init_conv(next(ks), f, f),
            "down": jax.random.normal(next(ks), (f, c_in), jnp.float32)
                    / np.sqrt(c_in),
        })
        c_in = f
    params["head"] = {
        "w1": jax.random.normal(next(ks), (128, 128), jnp.float32) / np.sqrt(128),
        "b1": jax.random.normal(next(ks), (1, 128), jnp.float32) * 0.05,
        "w2": jax.random.normal(next(ks), (128, 12), jnp.float32) / np.sqrt(128),
        "b2": jax.random.normal(next(ks), (1, 12), jnp.float32) * 0.05,
    }
    return params


# --------------------------------------------------------------------------- #
# Pure-JAX reference (lax.conv based) for correctness checking
# --------------------------------------------------------------------------- #
def _conv2plus1d_ref(x, p):
    Fo, C = p["ws"].shape[1], p["ws"].shape[2]
    ws = p["ws"].reshape(3, 3, Fo, C).transpose(2, 3, 0, 1)[:, :, None, :, :]
    y = lax.conv_general_dilated(
        x, ws, (1, 1, 1), [(0, 0), (1, 1), (1, 1)],
        dimension_numbers=("NCDHW", "OIDHW", "NCDHW"))
    y = y + p["bs"].reshape(1, Fo, 1, 1, 1)
    wt = p["wt"].transpose(1, 2, 0)[:, :, :, None, None]
    z = lax.conv_general_dilated(
        y, wt, (1, 1, 1), [(1, 1), (0, 0), (0, 0)],
        dimension_numbers=("NCDHW", "OIDHW", "NCDHW"))
    return z + p["bt"].reshape(1, Fo, 1, 1, 1)


def _maxpool_ref(x):
    B, C, T, H, W = x.shape
    return x.reshape(B, C, T // 2, 2, H // 2, 2, W // 2, 2).max(axis=(3, 5, 7))


def hmdb51_of_reference(x, params):
    z = jax.nn.relu(_conv2plus1d_ref(x, params["initial"]))
    n_blocks = len(params["blocks"])
    for i, blk in enumerate(params["blocks"]):
        res = jnp.einsum("oc,bcthw->bothw", blk["down"], z)
        y = jax.nn.relu(_conv2plus1d_ref(z, blk["conv1"]))
        z = _conv2plus1d_ref(y, blk["conv2"]) + res
        if i != n_blocks - 1:
            z = _maxpool_ref(z)
    feats = z.mean(axis=(2, 3, 4))
    h = jax.nn.relu(feats @ params["head"]["w1"] + params["head"]["b1"])
    return h @ params["head"]["w2"] + params["head"]["b2"]


# --------------------------------------------------------------------------- #
if __name__ == "__main__":
    B, C_in, T, H, W = 2, 2, 8, 16, 16        # optical-flow input: 2 channels

    # Calibrate pltpu.roll's rotation convention once (outside jit).
    roll_is_jnp = _probe_roll_is_jnp()

    key = jax.random.PRNGKey(0)
    pkey, xkey = jax.random.split(key)
    params = init_params(pkey)
    x = jax.random.normal(xkey, (B, C_in, T, H, W), dtype=jnp.float32)

    fwd = jax.jit(functools.partial(hmdb51_of_forward, roll_is_jnp=roll_is_jnp))
    out = fwd(x, params)
    jax.block_until_ready(out)
    assert out.shape == (B, 12)

    ref = jax.jit(hmdb51_of_reference)(x, params)
    # bf16 MXU operands (f32 accumulation) vs. the f32 lax.conv reference.
    np.testing.assert_allclose(np.asarray(out), np.asarray(ref),
                               rtol=3e-2, atol=3e-2)
    print("KERNEL_OK")
</pallas_src>

<mosaic_0001>
module attributes {stable_mosaic.version = 11 : i64} {
  func.func @kern(%arg0: i32, %arg1: memref<8x128xf32, #tpu.memory_space<vmem>>, %arg2: memref<8x128xf32, #tpu.memory_space<vmem>>) attributes {dimension_semantics = [#tpu.dimension_semantics<arbitrary>], iteration_bounds = array<i64: 1>, scalar_prefetch = 0 : i64, scratch_operands = 0 : i64, tpu.core_type = #tpu.core_type<tc>, window_params = [{pipeline_mode = #tpu.pipeline_mode<synchronous>, transform_indices = @transform_0, window_bounds = array<i64: 8, 128>}, {pipeline_mode = #tpu.pipeline_mode<synchronous>, transform_indices = @transform_1, window_bounds = array<i64: 8, 128>}]} {
    %c0 = arith.constant 0 : index
    %c0_0 = arith.constant 0 : index
    %0 = vector.load %arg1[%c0, %c0_0] : memref<8x128xf32, #tpu.memory_space<vmem>>, vector<8x128xf32>
    %c1_i32 = arith.constant 1 : i32
    %1 = tpu.dynamic_rotate %0 by %c1_i32 dim 1 : vector<8x128xf32>, i32 -> vector<8x128xf32>
    %c0_1 = arith.constant 0 : index
    %c0_2 = arith.constant 0 : index
    %2 = vector.load %arg2[%c0_1, %c0_2] : memref<8x128xf32, #tpu.memory_space<vmem>>, vector<8x128xf32>
    tpu.vector_store %arg2[%c0_1, %c0_2], %1 {strides = array<i32>} : memref<8x128xf32, #tpu.memory_space<vmem>>, vector<8x128xf32>,
    return
  }
  func.func @transform_0(%arg0: i32) -> (i32, i32) {
    %c0_i32 = arith.constant 0 : i32
    %c0_i32_0 = arith.constant 0 : i32
    %c0_i32_1 = arith.constant 0 : i32
    return %c0_i32, %c0_i32_0 : i32, i32
  }
  func.func @transform_1(%arg0: i32) -> (i32, i32) {
    %c0_i32 = arith.constant 0 : i32
    %c0_i32_0 = arith.constant 0 : i32
    %c0_i32_1 = arith.constant 0 : i32
    return %c0_i32, %c0_i32_0 : i32, i32
  }
}

</mosaic_0001>

<bundles_post_ra>
// kernel: tpu_custom_call.1
= control target key start
LH: loop header
LB: loop body
LE: loop exit
PB: predicated region body
PF: predicated region fallthrough
CT: control target
= control target key end

     0   :  { %6 = vsyncpa [#allocation3], 0  ;;  %s106_s0 = inlined_call_operand.hbm [shape: f32[8,128], index: 0, kind: input, shape index: {}]   ;;  %s107_s1 = inlined_call_operand.hbm [shape: f32[8,128], index: 1, kind: output, shape index: {}]  }
   0x1   :  { %7 = vsyncpa [#allocation4], 0  ;;  %s87_s6 = smov [#allocation2]  }
   0x2   :  { %s14_s7 = sshll.u32 %s87_s6, 4  ;;  %s15_s7 = int_to_ptr.vmem [resolvable:$true] %s14_s7 }
   0x3   :  { %s51_s8 = scalar_lea.vmem %s15_s7, 128  ;;  %p56_p1 = scmp.lt.s32.totalorder %s15_s7, %s15_s7 }
   0x4   :  { %p52_p0 = scmp.ne.s32.totalorder %s15_s7, %s51_s8  ;;  %p57_p2 = scmp.lt.s32.totalorder %s51_s8, %s51_s8 }
   0x6   :  { %p58_p3 = por %p57_p2, %p56_p1 }
   0x8   :  { %p59_p4 = pnand %p58_p3, %p52_p0 }
   0xa   :  { %62 = shalt.err (!%p59_p4)
}
   0xb   :  { %17 = dma.hbm_to_vmem [thread:$0]  %s106_s0, 128, %s15_s7, [#allocation3]  }
   0xc   :  { %83 = dma.done.wait [#allocation3], 128  }
   0xd   :  { %84 = vsyncadd [#allocation3], 4294967168  ;;  %v21_v0 = vld [vmem:[#allocation2] sm:$0xff]  ;;  %s88_s11 = smov 1   ;;  %s89_s12 = smov [#allocation5]  }
   0xe   :  { %22 = vrot.lane.b32.xlu0 %v21_v0, %s88_s11  ;;  %s31_s13 = sshll.u32 %s89_s12, 4  ;;  %s32_s13 = int_to_ptr.vmem [resolvable:$true] %s31_s13 }
   0xf   :  { %s63_s14 = scalar_lea.vmem %s32_s13, 128  ;;  %p68_p6 = scmp.lt.s32.totalorder %s32_s13, %s32_s13 }
  0x10   :  { %p64_p5 = scmp.ne.s32.totalorder %s32_s13, %s63_s14  ;;  %p69_p7 = scmp.lt.s32.totalorder %s63_s14, %s63_s14 }
  0x12   :  { %p70_p8 = por %p69_p7, %p68_p6 }
  0x14   :  { %p71_p9 = pnand %p70_p8, %p64_p5 }
  0x80   :  { %v23_v1 = vpop.permute.xlu0 %22 }
  0x81   :  { %24 = vst [vmem:[#allocation5] sm:$0xff] %v23_v1 }
  0x82   :  { %74 = shalt.err (!%p71_p9)
}
  0x83   :  { %34 = dma.vmem_to_hbm [thread:$0]  %s32_s13, 128, %s107_s1, [#allocation4]  }
  0x84   :  { %85 = dma.done.wait [#allocation4], 128  }
  0x85   :  { %86 = vsyncadd [#allocation4], 4294967168 }
  0x86   :  { %38 = vsyncpa [#allocation3], 1 }
  0x87   :  { %39 = vsyncpa [#allocation4], 1 }

</bundles_post_ra>
